<compile_context>
chip_gen: v7x
topology: tpu7x:2x2x1
jax: 0.10.0
libtpu: 0.0.40
codegen_flags: <defaults>
</compile_context>

<pallas_src>
import functools

import jax
import jax.numpy as jnp
from jax.experimental import pallas as pl
from jax.experimental.pallas import tpu as pltpu

EPS = 1e-5
OUT_PAD = 128  # lane-dense padded width for the n_classes output head


def mlp_kernel(x_ref, w1_ref, w_ref, p_ref, out_ref, *, batch, layer_size):
    """Whole forward in one invocation; everything VMEM-resident.

    x_ref:  [B, input_dim]            bf16
    w1_ref: [input_dim, D]            bf16
    w_ref:  [D, 2*D + OUT_PAD]        bf16  (w2 | w3 | w4_padded)
    p_ref:  [10, D]                   f32   (b1,g1,be1,b2,g2,be2,b3,g3,be3,b4_pad)
    out_ref:[B, OUT_PAD]              f32
    """
    D = layer_size
    inv_b = jnp.float32(1.0 / batch)
    p = p_ref[...]  # [10, D] f32 packed parameter slab

    def bn(h, gamma, beta):
        # One-pass training-mode BatchNorm1d stats (biased variance), then a
        # fused scale/shift apply on the wide (B, D) tensor.
        s1 = jnp.sum(h, axis=0, keepdims=True)
        s2 = jnp.sum(h * h, axis=0, keepdims=True)
        mean = s1 * inv_b
        var = jnp.maximum(s2 * inv_b - mean * mean, 0.0)  # guard cancellation
        scale = gamma * jax.lax.rsqrt(var + EPS)           # (1, D)
        shift = beta - mean * scale                        # (1, D)
        return h * scale + shift

    def layer(h_bf16, w, b, g, be):
        # bf16 operands into the MXU, f32 accumulation, f32 elementwise.
        z = jnp.dot(h_bf16, w, preferred_element_type=jnp.float32) + b
        return bn(jnp.maximum(z, 0.0), g, be)

    h = layer(x_ref[...], w1_ref[...], p[0:1], p[1:2], p[2:3])
    h = layer(h.astype(jnp.bfloat16), w_ref[:, 0:D], p[3:4], p[4:5], p[5:6])
    h = layer(h.astype(jnp.bfloat16), w_ref[:, D:2 * D], p[6:7], p[7:8], p[8:9])

    # Lane-dense (width-128) padded output head -> unmasked full-lane store.
    logits = jnp.dot(h.astype(jnp.bfloat16), w_ref[:, 2 * D:2 * D + OUT_PAD],
                     preferred_element_type=jnp.float32) + p[9:10, :OUT_PAD]
    out_ref[...] = logits.astype(out_ref.dtype)


def prepare_params(params):
    """One-time packing/casting of parameters (hoisted out of the hot path).

    params weights are stored as [in, out] (transpose of PyTorch's [out, in]).
    """
    input_dim, layer_size = params["w1"].shape
    n_classes = params["w4"].shape[1]
    assert n_classes <= OUT_PAD
    assert layer_size >= OUT_PAD  # b4 row is stored inside the [10, D] slab

    # fc1 weight, bf16 (native MXU dtype; halves the weight DMA).
    w1 = params["w1"].astype(jnp.bfloat16)

    # Merge w2 | w3 | w4(zero-padded to 128 lanes) into ONE bf16 slab.
    w4_pad = jnp.zeros((layer_size, OUT_PAD), jnp.float32)
    w4_pad = w4_pad.at[:, :n_classes].set(params["w4"])
    w_slab = jnp.concatenate([params["w2"], params["w3"], w4_pad],
                             axis=1).astype(jnp.bfloat16)

    # Pack the 10 tiny per-feature parameter rows into one [10, D] f32 slab.
    b4_pad = jnp.zeros((1, layer_size), jnp.float32)
    b4_pad = b4_pad.at[0, :n_classes].set(params["b4"][0])
    p_slab = jnp.concatenate(
        [
            params["b1"], params["g1"], params["be1"],
            params["b2"], params["g2"], params["be2"],
            params["b3"], params["g3"], params["be3"],
            b4_pad,
        ],
        axis=0,
    )

    return dict(w1=w1, w_slab=w_slab, p_slab=p_slab,
                n_classes=n_classes, layer_size=layer_size)


def abd_pain_mlp_forward_padded(x, w1, w_slab, p_slab):
    """Hot path: x [B, input_dim] f32 + prepacked params -> [B, OUT_PAD] f32.

    The caller slices [:, :n_classes] (fuses into the consumer under jit).
    """
    B, input_dim = x.shape
    D = w1.shape[1]

    flops = 2 * B * (input_dim * D + 2 * D * D + D * OUT_PAD)
    bytes_accessed = (
        B * input_dim * 2          # x (bf16)
        + w1.size * 2              # bf16 weights
        + w_slab.size * 2
        + p_slab.size * 4
        + B * OUT_PAD * 4          # output
    )
    cost = pl.CostEstimate(flops=flops, transcendentals=3 * D,
                           bytes_accessed=bytes_accessed)

    kernel = functools.partial(mlp_kernel, batch=B, layer_size=D)
    args = (x.astype(jnp.bfloat16), w1, w_slab, p_slab)

    return pl.pallas_call(
        kernel,
        out_shape=jax.ShapeDtypeStruct((B, OUT_PAD), jnp.float32),
        in_specs=[pl.BlockSpec(memory_space=pltpu.VMEM) for _ in args],
        out_specs=pl.BlockSpec(memory_space=pltpu.VMEM),
        cost_estimate=cost,
    )(*args)


def init_params(key, input_dim, layer_size, n_classes):
    """Deterministic synthetic init matching the PyTorch module's shapes.

    PyTorch stores Linear weight as [out, in]; we store the transpose [in, out]
    so the kernel computes x @ W directly.
    """
    ks = jax.random.split(key, 8)

    def linear(kw, kb, fan_in, fan_out):
        bound = 1.0 / jnp.sqrt(jnp.float32(fan_in))
        w = jax.random.uniform(kw, (fan_in, fan_out), jnp.float32, -bound, bound)
        b = jax.random.uniform(kb, (1, fan_out), jnp.float32, -bound, bound)
        return w, b

    w1, b1 = linear(ks[0], ks[1], input_dim, layer_size)
    w2, b2 = linear(ks[2], ks[3], layer_size, layer_size)
    w3, b3 = linear(ks[4], ks[5], layer_size, layer_size)
    w4, b4 = linear(ks[6], ks[7], layer_size, n_classes)

    ones = jnp.ones((1, layer_size), jnp.float32)
    zeros = jnp.zeros((1, layer_size), jnp.float32)

    return dict(
        w1=w1, b1=b1, g1=ones, be1=zeros,
        w2=w2, b2=b2, g2=ones, be2=zeros,
        w3=w3, b3=b3, g3=ones, be3=zeros,
        w4=w4, b4=b4,
    )


def reference_forward(x, p, matmul_dtype=jnp.float32, one_pass_var=False):
    """Pure-JAX reference. matmul_dtype=bf16 / one_pass_var=True mirrors the
    kernel's math; f32 / two-pass mirrors the PyTorch module."""

    def dot(a, b):
        return jnp.dot(a.astype(matmul_dtype), b.astype(matmul_dtype),
                       preferred_element_type=jnp.float32)

    def bn(h):
        m = jnp.mean(h, axis=0, keepdims=True)
        if one_pass_var:
            v = jnp.maximum(jnp.mean(h * h, axis=0, keepdims=True) - m * m, 0.0)
        else:
            v = jnp.mean((h - m) ** 2, axis=0, keepdims=True)
        return (h - m) * jax.lax.rsqrt(v + EPS)

    h = bn(jnp.maximum(dot(x, p["w1"]) + p["b1"], 0.0)) * p["g1"] + p["be1"]
    h = bn(jnp.maximum(dot(h, p["w2"]) + p["b2"], 0.0)) * p["g2"] + p["be2"]
    h = bn(jnp.maximum(dot(h, p["w3"]) + p["b3"], 0.0)) * p["g3"] + p["be3"]
    return dot(h, p["w4"]) + p["b4"]


if __name__ == "__main__":
    key = jax.random.PRNGKey(0)
    k_x, k_p = jax.random.split(key)

    batch = 8
    input_dim = 32
    layer_size = 256
    n_classes = 8

    x = jax.random.normal(k_x, (batch, input_dim), jnp.float32)
    params = init_params(k_p, input_dim, layer_size, n_classes)

    # One-time parameter packing (outside the hot path).
    packed = prepare_params(params)

    fwd = jax.jit(abd_pain_mlp_forward_padded)
    out_padded = fwd(x, packed["w1"], packed["w_slab"], packed["p_slab"])
    out_padded = jax.block_until_ready(out_padded)
    assert out_padded.shape == (batch, OUT_PAD)

    out = out_padded[:, :n_classes]

    # Tight check vs. a reference mirroring the kernel math (bf16 matmul
    # operands, one-pass BN variance).
    ref_matched = reference_forward(x, params, matmul_dtype=jnp.bfloat16,
                                    one_pass_var=True)
    assert jnp.allclose(out, ref_matched, atol=2e-3, rtol=2e-3), \
        "mismatch vs matched reference"

    # Loose check vs. the exact PyTorch-semantics f32 reference (bf16 matmul
    # operands introduce small deviations; BN re-normalizes each layer).
    ref_f32 = reference_forward(x, params)
    assert jnp.allclose(out, ref_f32, atol=6e-2, rtol=6e-2), \
        "mismatch vs f32 reference"

    print("KERNEL_OK")
</pallas_src>

<mosaic_0001>
module attributes {stable_mosaic.version = 11 : i64} {
  func.func @mlp_kernel(%arg0: memref<8x32xbf16, #tpu.memory_space<vmem>>, %arg1: memref<32x256xbf16, #tpu.memory_space<vmem>>, %arg2: memref<256x640xbf16, #tpu.memory_space<vmem>>, %arg3: memref<10x256xf32, #tpu.memory_space<vmem>>, %arg4: memref<8x128xf32, #tpu.memory_space<vmem>>) attributes {dimension_semantics = [], scalar_prefetch = 0 : i64, scratch_operands = 0 : i64, tpu.core_type = #tpu.core_type<tc>} {
    %c0 = arith.constant 0 : index
    %c0_0 = arith.constant 0 : index
    %0 = vector.load %arg3[%c0, %c0_0] : memref<10x256xf32, #tpu.memory_space<vmem>>, vector<10x256xf32>
    %c0_1 = arith.constant 0 : index
    %c0_2 = arith.constant 0 : index
    %1 = vector.load %arg0[%c0_1, %c0_2] : memref<8x32xbf16, #tpu.memory_space<vmem>>, vector<8x32xbf16>
    %c0_3 = arith.constant 0 : index
    %c0_4 = arith.constant 0 : index
    %2 = vector.load %arg1[%c0_3, %c0_4] : memref<32x256xbf16, #tpu.memory_space<vmem>>, vector<32x256xbf16>
    %3 = vector.extract_strided_slice %0 {offsets = [0, 0], sizes = [1, 256], strides = [1, 1]} : vector<10x256xf32> to vector<1x256xf32>
    %4 = vector.extract_strided_slice %0 {offsets = [1, 0], sizes = [1, 256], strides = [1, 1]} : vector<10x256xf32> to vector<1x256xf32>
    %5 = vector.extract_strided_slice %0 {offsets = [2, 0], sizes = [1, 256], strides = [1, 1]} : vector<10x256xf32> to vector<1x256xf32>
    %cst = arith.constant dense<0.000000e+00> : vector<8x256xf32>
    %6 = tpu.matmul %1, %2, %cst {dimension_numbers = #tpu.dot_dimension_numbers<[1], [0], [0], [1], [0, 0, 1, 1], [], []>} : vector<8x32xbf16>, vector<32x256xbf16>, vector<8x256xf32> -> vector<8x256xf32>
    %7 = vector.broadcast %3 : vector<1x256xf32> to vector<8x256xf32>
    %8 = arith.addf %6, %7 : vector<8x256xf32>
    %cst_5 = arith.constant 0.000000e+00 : f32
    %9 = vector.broadcast %cst_5 : f32 to vector<8x256xf32>
    %10 = arith.maximumf %8, %9 : vector<8x256xf32>
    %cst_6 = arith.constant dense<0.000000e+00> : vector<256xf32>
    %11 = vector.multi_reduction <add>, %10, %cst_6 [0] : vector<8x256xf32> to vector<256xf32>
    %12 = vector.shape_cast %11 : vector<256xf32> to vector<1x256xf32>
    %13 = arith.mulf %10, %10 : vector<8x256xf32>
    %cst_7 = arith.constant dense<0.000000e+00> : vector<256xf32>
    %14 = vector.multi_reduction <add>, %13, %cst_7 [0] : vector<8x256xf32> to vector<256xf32>
    %15 = vector.shape_cast %14 : vector<256xf32> to vector<1x256xf32>
    %cst_8 = arith.constant 1.250000e-01 : f32
    %16 = vector.broadcast %cst_8 : f32 to vector<1x256xf32>
    %17 = arith.mulf %12, %16 : vector<1x256xf32>
    %cst_9 = arith.constant 1.250000e-01 : f32
    %18 = vector.broadcast %cst_9 : f32 to vector<1x256xf32>
    %19 = arith.mulf %15, %18 : vector<1x256xf32>
    %20 = arith.mulf %17, %17 : vector<1x256xf32>
    %21 = arith.subf %19, %20 : vector<1x256xf32>
    %cst_10 = arith.constant 0.000000e+00 : f32
    %22 = vector.broadcast %cst_10 : f32 to vector<1x256xf32>
    %23 = arith.maximumf %21, %22 : vector<1x256xf32>
    %cst_11 = arith.constant 9.99999974E-6 : f32
    %24 = vector.broadcast %cst_11 : f32 to vector<1x256xf32>
    %25 = arith.addf %23, %24 : vector<1x256xf32>
    %26 = math.rsqrt %25 : vector<1x256xf32>
    %27 = arith.mulf %4, %26 : vector<1x256xf32>
    %28 = arith.mulf %17, %27 : vector<1x256xf32>
    %29 = arith.subf %5, %28 : vector<1x256xf32>
    %30 = vector.broadcast %27 : vector<1x256xf32> to vector<8x256xf32>
    %31 = arith.mulf %10, %30 : vector<8x256xf32>
    %32 = vector.broadcast %29 : vector<1x256xf32> to vector<8x256xf32>
    %33 = arith.addf %31, %32 : vector<8x256xf32>
    %34 = arith.truncf %33 : vector<8x256xf32> to vector<8x256xbf16>
    %c0_12 = arith.constant 0 : index
    %c0_13 = arith.constant 0 : index
    %35 = vector.load %arg2[%c0_12, %c0_13] : memref<256x640xbf16, #tpu.memory_space<vmem>>, vector<256x256xbf16>
    %36 = vector.extract_strided_slice %0 {offsets = [3, 0], sizes = [1, 256], strides = [1, 1]} : vector<10x256xf32> to vector<1x256xf32>
    %37 = vector.extract_strided_slice %0 {offsets = [4, 0], sizes = [1, 256], strides = [1, 1]} : vector<10x256xf32> to vector<1x256xf32>
    %38 = vector.extract_strided_slice %0 {offsets = [5, 0], sizes = [1, 256], strides = [1, 1]} : vector<10x256xf32> to vector<1x256xf32>
    %cst_14 = arith.constant dense<0.000000e+00> : vector<8x256xf32>
    %39 = tpu.matmul %34, %35, %cst_14 {dimension_numbers = #tpu.dot_dimension_numbers<[1], [0], [0], [1], [0, 0, 1, 1], [], []>} : vector<8x256xbf16>, vector<256x256xbf16>, vector<8x256xf32> -> vector<8x256xf32>
    %40 = vector.broadcast %36 : vector<1x256xf32> to vector<8x256xf32>
    %41 = arith.addf %39, %40 : vector<8x256xf32>
    %cst_15 = arith.constant 0.000000e+00 : f32
    %42 = vector.broadcast %cst_15 : f32 to vector<8x256xf32>
    %43 = arith.maximumf %41, %42 : vector<8x256xf32>
    %cst_16 = arith.constant dense<0.000000e+00> : vector<256xf32>
    %44 = vector.multi_reduction <add>, %43, %cst_16 [0] : vector<8x256xf32> to vector<256xf32>
    %45 = vector.shape_cast %44 : vector<256xf32> to vector<1x256xf32>
    %46 = arith.mulf %43, %43 : vector<8x256xf32>
    %cst_17 = arith.constant dense<0.000000e+00> : vector<256xf32>
    %47 = vector.multi_reduction <add>, %46, %cst_17 [0] : vector<8x256xf32> to vector<256xf32>
    %48 = vector.shape_cast %47 : vector<256xf32> to vector<1x256xf32>
    %cst_18 = arith.constant 1.250000e-01 : f32
    %49 = vector.broadcast %cst_18 : f32 to vector<1x256xf32>
    %50 = arith.mulf %45, %49 : vector<1x256xf32>
    %cst_19 = arith.constant 1.250000e-01 : f32
    %51 = vector.broadcast %cst_19 : f32 to vector<1x256xf32>
    %52 = arith.mulf %48, %51 : vector<1x256xf32>
    %53 = arith.mulf %50, %50 : vector<1x256xf32>
    %54 = arith.subf %52, %53 : vector<1x256xf32>
    %cst_20 = arith.constant 0.000000e+00 : f32
    %55 = vector.broadcast %cst_20 : f32 to vector<1x256xf32>
    %56 = arith.maximumf %54, %55 : vector<1x256xf32>
    %cst_21 = arith.constant 9.99999974E-6 : f32
    %57 = vector.broadcast %cst_21 : f32 to vector<1x256xf32>
    %58 = arith.addf %56, %57 : vector<1x256xf32>
    %59 = math.rsqrt %58 : vector<1x256xf32>
    %60 = arith.mulf %37, %59 : vector<1x256xf32>
    %61 = arith.mulf %50, %60 : vector<1x256xf32>
    %62 = arith.subf %38, %61 : vector<1x256xf32>
    %63 = vector.broadcast %60 : vector<1x256xf32> to vector<8x256xf32>
    %64 = arith.mulf %43, %63 : vector<8x256xf32>
    %65 = vector.broadcast %62 : vector<1x256xf32> to vector<8x256xf32>
    %66 = arith.addf %64, %65 : vector<8x256xf32>
    %67 = arith.truncf %66 : vector<8x256xf32> to vector<8x256xbf16>
    %c0_22 = arith.constant 0 : index
    %c256 = arith.constant 256 : index
    %68 = vector.load %arg2[%c0_22, %c256] : memref<256x640xbf16, #tpu.memory_space<vmem>>, vector<256x256xbf16>
    %69 = vector.extract_strided_slice %0 {offsets = [6, 0], sizes = [1, 256], strides = [1, 1]} : vector<10x256xf32> to vector<1x256xf32>
    %70 = vector.extract_strided_slice %0 {offsets = [7, 0], sizes = [1, 256], strides = [1, 1]} : vector<10x256xf32> to vector<1x256xf32>
    %71 = vector.extract_strided_slice %0 {offsets = [8, 0], sizes = [1, 256], strides = [1, 1]} : vector<10x256xf32> to vector<1x256xf32>
    %cst_23 = arith.constant dense<0.000000e+00> : vector<8x256xf32>
    %72 = tpu.matmul %67, %68, %cst_23 {dimension_numbers = #tpu.dot_dimension_numbers<[1], [0], [0], [1], [0, 0, 1, 1], [], []>} : vector<8x256xbf16>, vector<256x256xbf16>, vector<8x256xf32> -> vector<8x256xf32>
    %73 = vector.broadcast %69 : vector<1x256xf32> to vector<8x256xf32>
    %74 = arith.addf %72, %73 : vector<8x256xf32>
    %cst_24 = arith.constant 0.000000e+00 : f32
    %75 = vector.broadcast %cst_24 : f32 to vector<8x256xf32>
    %76 = arith.maximumf %74, %75 : vector<8x256xf32>
    %cst_25 = arith.constant dense<0.000000e+00> : vector<256xf32>
    %77 = vector.multi_reduction <add>, %76, %cst_25 [0] : vector<8x256xf32> to vector<256xf32>
    %78 = vector.shape_cast %77 : vector<256xf32> to vector<1x256xf32>
    %79 = arith.mulf %76, %76 : vector<8x256xf32>
    %cst_26 = arith.constant dense<0.000000e+00> : vector<256xf32>
    %80 = vector.multi_reduction <add>, %79, %cst_26 [0] : vector<8x256xf32> to vector<256xf32>
    %81 = vector.shape_cast %80 : vector<256xf32> to vector<1x256xf32>
    %cst_27 = arith.constant 1.250000e-01 : f32
    %82 = vector.broadcast %cst_27 : f32 to vector<1x256xf32>
    %83 = arith.mulf %78, %82 : vector<1x256xf32>
    %cst_28 = arith.constant 1.250000e-01 : f32
    %84 = vector.broadcast %cst_28 : f32 to vector<1x256xf32>
    %85 = arith.mulf %81, %84 : vector<1x256xf32>
    %86 = arith.mulf %83, %83 : vector<1x256xf32>
    %87 = arith.subf %85, %86 : vector<1x256xf32>
    %cst_29 = arith.constant 0.000000e+00 : f32
    %88 = vector.broadcast %cst_29 : f32 to vector<1x256xf32>
    %89 = arith.maximumf %87, %88 : vector<1x256xf32>
    %cst_30 = arith.constant 9.99999974E-6 : f32
    %90 = vector.broadcast %cst_30 : f32 to vector<1x256xf32>
    %91 = arith.addf %89, %90 : vector<1x256xf32>
    %92 = math.rsqrt %91 : vector<1x256xf32>
    %93 = arith.mulf %70, %92 : vector<1x256xf32>
    %94 = arith.mulf %83, %93 : vector<1x256xf32>
    %95 = arith.subf %71, %94 : vector<1x256xf32>
    %96 = vector.broadcast %93 : vector<1x256xf32> to vector<8x256xf32>
    %97 = arith.mulf %76, %96 : vector<8x256xf32>
    %98 = vector.broadcast %95 : vector<1x256xf32> to vector<8x256xf32>
    %99 = arith.addf %97, %98 : vector<8x256xf32>
    %100 = arith.truncf %99 : vector<8x256xf32> to vector<8x256xbf16>
    %c0_31 = arith.constant 0 : index
    %c512 = arith.constant 512 : index
    %101 = vector.load %arg2[%c0_31, %c512] : memref<256x640xbf16, #tpu.memory_space<vmem>>, vector<256x128xbf16>
    %cst_32 = arith.constant dense<0.000000e+00> : vector<8x128xf32>
    %102 = tpu.matmul %100, %101, %cst_32 {dimension_numbers = #tpu.dot_dimension_numbers<[1], [0], [0], [1], [0, 0, 1, 1], [], []>} : vector<8x256xbf16>, vector<256x128xbf16>, vector<8x128xf32> -> vector<8x128xf32>
    %103 = vector.extract_strided_slice %0 {offsets = [9, 0], sizes = [1, 128], strides = [1, 1]} : vector<10x256xf32> to vector<1x128xf32>
    %104 = vector.broadcast %103 : vector<1x128xf32> to vector<8x128xf32>
    %105 = arith.addf %102, %104 : vector<8x128xf32>
    %c0_33 = arith.constant 0 : index
    %c0_34 = arith.constant 0 : index
    %106 = vector.load %arg4[%c0_33, %c0_34] : memref<8x128xf32, #tpu.memory_space<vmem>>, vector<8x128xf32>
    tpu.vector_store %arg4[%c0_33, %c0_34], %105 {strides = array<i32>} : memref<8x128xf32, #tpu.memory_space<vmem>>, vector<8x128xf32>,
    return
  }
}

</mosaic_0001>

<bundles_post_ra>
// kernel: abd_pain_mlp_forward_padded.1
= control target key start
LH: loop header
LB: loop body
LE: loop exit
PB: predicated region body
PF: predicated region fallthrough
CT: control target
= control target key end

     0   :  { %9 = vsyncpa [#allocation3], 0  ;;  %s1511_s0 = inlined_call_operand.vmem [shape: bf16[8,32], index: 0, kind: input, shape index: {}]   ;;  %s1512_s1 = inlined_call_operand.hbm [shape: bf16[32,256], index: 1, kind: input, shape index: {}]   ;;  %s1513_s2 = inlined_call_operand.hbm [shape: bf16[256,640], index: 2, kind: input, shape index: {}]   ;;  %s1514_s3 = inlined_call_operand.hbm [shape: f32[10,256], index: 3, kind: input, shape index: {}]   ;;  %s1515_s4 = inlined_call_operand.hbm [shape: f32[8,128], index: 4, kind: output, shape index: {}]  }
   0x1   :  { %10 = vsyncpa [#allocation6], 0 }
   0x2   :  { %11 = vsyncpa [#allocation4], 0  ;;  %s1383_s15 = smov [#allocation5]   ;;  %s1289_s19 = scalar_lea.hbm %s1513_s2, 10240 }
   0x3   :  { %s31_s16 = sshll.u32 %s1383_s15, 4  ;;  %p1290_p0 = scmp.ne.s32.totalorder %s1513_s2, %s1289_s19  ;;  %s32_s16 = int_to_ptr.vmem [resolvable:$true] %s31_s16 }
   0x4   :  { %p1293_p1 = scmp.lt.u32.totalorder %s1289_s19, %s1513_s2 }
   0x6   :  { %p1295_p2 = pnand %p1293_p1, %p1290_p0 }
   0x8   :  { %1298 = shalt.err (!%p1295_p2)
}
   0x9   :  { %s1299_s24 = scalar_lea.vmem %s32_s16, 10240  ;;  %p1304_p4 = scmp.lt.s32.totalorder %s32_s16, %s32_s16 }
   0xa   :  { %p1300_p3 = scmp.ne.s32.totalorder %s32_s16, %s1299_s24  ;;  %p1305_p5 = scmp.lt.s32.totalorder %s1299_s24, %s1299_s24 }
   0xc   :  { %p1306_p6 = por %p1305_p5, %p1304_p4 }
   0xe   :  { %p1307_p7 = pnand %p1306_p6, %p1300_p3 }
  0x10   :  { %1310 = shalt.err (!%p1307_p7)
}
  0x11   :  { %s1384_s25 = smov 320   ;;  %s1385_s26 = smov 20  }
  0x12   :  { %37 = dma.hbm_to_vmem [thread:$0]  %s1513_s2, 10240, %s32_s16, [#allocation6], %s1384_s25, %s1384_s25, %s1385_s26  }
  0x13   :  { %s1386_s29 = smov [#allocation2]   ;;  %s1311_s7 = scalar_lea.hbm %s1512_s1, 512 }
  0x14   :  { %s19_s30 = sshll.u32 %s1386_s29, 4  ;;  %p1312_p8 = scmp.ne.s32.totalorder %s1512_s1, %s1311_s7  ;;  %s20_s30 = int_to_ptr.vmem [resolvable:$true] %s19_s30 }
  0x15   :  { %p1315_p9 = scmp.lt.u32.totalorder %s1311_s7, %s1512_s1 }
  0x17   :  { %p1317_p10 = pnand %p1315_p9, %p1312_p8 }
  0x19   :  { %1320 = shalt.err (!%p1317_p10)
}
  0x1a   :  { %s1321_s12 = scalar_lea.vmem %s20_s30, 512  ;;  %p1326_p12 = scmp.lt.s32.totalorder %s20_s30, %s20_s30 }
  0x1b   :  { %p1322_p11 = scmp.ne.s32.totalorder %s20_s30, %s1321_s12  ;;  %p1327_p13 = scmp.lt.s32.totalorder %s1321_s12, %s1321_s12 }
  0x1d   :  { %p1328_p0 = por %p1327_p13, %p1326_p12 }
  0x1f   :  { %p1329_p1 = pnand %p1328_p0, %p1322_p11 }
  0x21   :  { %1332 = shalt.err (!%p1329_p1)
}
  0x22   :  { %s1387_s2 = smov 128   ;;  %s1388_s13 = smov 8  }
  0x23   :  { %25 = dma.hbm_to_vmem [thread:$0]  %s1512_s1, 512, %s20_s30, [#allocation3], %s1387_s2, %s1387_s2, %s1388_s13  }
  0x24   :  { %s1389_s16 = smov [#allocation7]   ;;  %s1333_s20 = scalar_lea.hbm %s1514_s3, 512 }
  0x25   :  { %s43_s17 = sshll.u32 %s1389_s16, 4  ;;  %p1334_p2 = scmp.ne.s32.totalorder %s1514_s3, %s1333_s20  ;;  %s44_s17 = int_to_ptr.vmem [resolvable:$true] %s43_s17 }
  0x26   :  { %p1337_p3 = scmp.lt.u32.totalorder %s1333_s20, %s1514_s3 }
  0x28   :  { %p1339_p4 = pnand %p1337_p3, %p1334_p2 }
  0x2a   :  { %1342 = shalt.err (!%p1339_p4)
}
  0x2b   :  { %s1343_s25 = scalar_lea.vmem %s44_s17, 512  ;;  %p1348_p6 = scmp.lt.s32.totalorder %s44_s17, %s44_s17 }
  0x2c   :  { %p1344_p5 = scmp.ne.s32.totalorder %s44_s17, %s1343_s25  ;;  %p1349_p7 = scmp.lt.s32.totalorder %s1343_s25, %s1343_s25 }
  0x2e   :  { %p1350_p8 = por %p1349_p7, %p1348_p6 }
  0x30   :  { %p1351_p9 = pnand %p1350_p8, %p1344_p5 }
  0x32   :  { %1354 = shalt.err (!%p1351_p9)
}
  0x33   :  { %s1390_s1 = smov 256   ;;  %s1391_s26 = smov 16  }
  0x34   :  { %49 = dma.hbm_to_vmem [thread:$0]  %s1514_s3, 512, %s44_s17, [#allocation6], %s1390_s1, %s1390_s1, %s1391_s26  }
  0x35   :  { %1377 = dma.done.wait [#allocation3], 512  }
  0x36   :  { %1378 = vsyncadd [#allocation3], 4294966784 }
  0x37   :  { %1379 = dma.done.wait [#allocation6], 10752  }
  0x38   :  { %1380 = vsyncadd [#allocation6], 4294956544  ;;  %v1392_v0 = vmov 0   ;;  %v1159_v1 = vld [vmem:[#allocation2 + $0x4] ss:$8 sps:$4 sm:$0xff]   ;;  %vm97_vm0 = vcmask 261120   ;;  %v69_v44 = vlaneseq }
  0x39   :  { %133 = vmatprep.mubr.bf16.mxu0 %v1392_v0  ;;  %v1161_v2 = vld [vmem:[#allocation2] ss:$8 sps:$4 sm:$0xff]   ;;  %101 = vmatprep.subr.bf16.mxu0 %v1159_v1  ;;  %v1162_v3 = vld [vmem:[#allocation2 + $0x14] ss:$8 sps:$4 sm:$0xff]   ;;  %v1164_v4 = vld [vmem:[#allocation2 + $0x10] ss:$8 sps:$4 sm:$0xff]  }
  0x3a   :  { %102 = vmatpush1.bf16.msra.mxu0 %v1161_v2  ;;  %v1165_v5 = vld [vmem:[#allocation5 + $0x4] ss:$20 sps:$4 sm:$0xff]   ;;  %v1167_v6 = vld [vmem:[#allocation5] ss:$20 sps:$4 sm:$0xff]   ;;  %v1170_v9 = vld [vmem:[#allocation5 + $0x28] ss:$20 sps:$4 sm:$0xff]  }
  0x3b   :  { %103 = vmatprep.subr.bf16.mxu0 %v1162_v3  ;;  %418 = vmatprep.subr.bf16.mxu1 %v1165_v5  ;;  %v1168_v7 = vld [vmem:[#allocation5 + $0x2c] ss:$20 sps:$4 sm:$0xff]   ;;  %v64_v8 = vld [vmem:[%s1511_s0] sm:$0xf]  ;;  %v1171_v10 = vld [vmem:[#allocation5 + $0x54] ss:$20 sps:$4 sm:$0xff]  }
  0x3c   :  { %419 = vmatpush1.bf16.msra.mxu1 %v1167_v6  ;;  %v1173_v11 = vld [vmem:[#allocation5 + $0x50] ss:$20 sps:$4 sm:$0xff]   ;;  %v1176_v13 = vld [vmem:[#allocation5 + $0x78] ss:$20 sps:$4 sm:$0xff]   ;;  %v1179_v15 = vld [vmem:[#allocation5 + $0xa0] ss:$20 sps:$4 sm:$0xff]  }
  0x3d   :  { %420 = vmatprep.subr.bf16.mxu1 %v1168_v7  ;;  %v1174_v12 = vld [vmem:[#allocation5 + $0x7c] ss:$20 sps:$4 sm:$0xff]   ;;  %v1177_v14 = vld [vmem:[#allocation5 + $0xa4] ss:$20 sps:$4 sm:$0xff]   ;;  %v1180_v16 = vld [vmem:[#allocation5 + $0xcc] ss:$20 sps:$4 sm:$0xff]  }
  0x3e   :  { %104 = vmatpush1.bf16.msra.mxu0 %v1164_v4  ;;  %v1182_v17 = vld [vmem:[#allocation5 + $0xc8] ss:$20 sps:$4 sm:$0xff]   ;;  %v1185_v19 = vld [vmem:[#allocation5 + $0xf0] ss:$20 sps:$4 sm:$0xff]   ;;  %v1188_v21 = vld [vmem:[#allocation5 + $0x118] ss:$20 sps:$4 sm:$0xff]  }
  0x3f   :  { %v1183_v18 = vld [vmem:[#allocation5 + $0xf4] ss:$20 sps:$4 sm:$0xff]   ;;  %v1186_v20 = vld [vmem:[#allocation5 + $0x11c] ss:$20 sps:$4 sm:$0xff]   ;;  %v1189_v22 = vld [vmem:[#allocation5 + $0x144] ss:$20 sps:$4 sm:$0xff]  }
  0x40   :  { %421 = vmatpush1.bf16.msra.mxu1 %v1170_v9  ;;  %v1191_v23 = vld [vmem:[#allocation5 + $0x140] ss:$20 sps:$4 sm:$0xff]   ;;  %v1194_v25 = vld [vmem:[#allocation5 + $0x168] ss:$20 sps:$4 sm:$0xff]   ;;  %v1197_v27 = vld [vmem:[#allocation5 + $0x190] ss:$20 sps:$4 sm:$0xff]  }
  0x41   :  { %1045 = vmatmul.mubr.msk.bf16.vlgmr.msra.gmra.mrb[0].mxu0 %vm97_vm0, %v64_v8  ;;  %422 = vmatprep.subr.bf16.mxu1 %v1171_v10  ;;  %v1192_v24 = vld [vmem:[#allocation5 + $0x16c] ss:$20 sps:$4 sm:$0xff]   ;;  %v1195_v26 = vld [vmem:[#allocation5 + $0x194] ss:$20 sps:$4 sm:$0xff]   ;;  %v1198_v28 = vld [vmem:[#allocation5 + $0x1bc] ss:$20 sps:$4 sm:$0xff]  }
  0x42   :  { %v1200_v29 = vld [vmem:[#allocation5 + $0x1b8] ss:$20 sps:$4 sm:$0xff]   ;;  %v1203_v31 = vld [vmem:[#allocation5 + $0x1e0] ss:$20 sps:$4 sm:$0xff]   ;;  %v1206_v33 = vld [vmem:[#allocation5 + $0x208] ss:$20 sps:$4 sm:$0xff]  }
  0x43   :  { %v1201_v30 = vld [vmem:[#allocation5 + $0x1e4] ss:$20 sps:$4 sm:$0xff]   ;;  %v1204_v32 = vld [vmem:[#allocation5 + $0x20c] ss:$20 sps:$4 sm:$0xff]   ;;  %v1207_v34 = vld [vmem:[#allocation5 + $0x234] ss:$20 sps:$4 sm:$0xff]  }
  0x44   :  { %423 = vmatpush1.bf16.msra.mxu1 %v1173_v11  ;;  %v1209_v35 = vld [vmem:[#allocation5 + $0x230] ss:$20 sps:$4 sm:$0xff]   ;;  %v1212_v37 = vld [vmem:[#allocation5 + $0x258] ss:$20 sps:$4 sm:$0xff]   ;;  %v1213_v38 = vld [vmem:[#allocation5 + $0x8] ss:$20 sps:$4 sm:$0xff]  }
  0x45   :  { %424 = vmatprep.subr.bf16.mxu1 %v1174_v12  ;;  %v1210_v36 = vld [vmem:[#allocation5 + $0x25c] ss:$20 sps:$4 sm:$0xff]   ;;  %v1215_v39 = vld [vmem:[#allocation5 + $0xc] ss:$20 sps:$4 sm:$0xff]   ;;  %v1218_v40 = vld [vmem:[#allocation5 + $0x34] ss:$20 sps:$4 sm:$0xff]  }
  0x46   :  { %735 = vmatprep.subr.bf16.mxu0 %v1215_v39  ;;  %v1216_v41 = vld [vmem:[#allocation5 + $0x30] ss:$20 sps:$4 sm:$0xff]   ;;  %v1219_v43 = vld [vmem:[#allocation5 + $0x58] ss:$20 sps:$4 sm:$0xff]   ;;  %v1458_v45 = vshrl.u32 %v69_v44, 7  ;;  %s1393_s0 = smov [#allocation8]  }
  0x47   :  { %736 = vmatpush1.bf16.msra.mxu0 %v1213_v38  ;;  %v1221_v42 = vld [vmem:[#allocation5 + $0x5c] ss:$20 sps:$4 sm:$0xff]   ;;  %v1463_v47 = vld [vmem:[#allocation7] sm:$0xff]  ;;  %v1465_v48 = vld [vmem:[#allocation7 + $0x8] sm:$0xff]  ;;  %s1031_s3 = sshll.u32 %s1393_s0, 4  ;;  %s1032_s3 = int_to_ptr.vmem [resolvable:$true] %s1031_s3 }
  0x48   :  { %425 = vmatpush1.bf16.msra.mxu1 %v1176_v13  ;;  %737 = vmatprep.subr.bf16.mxu0 %v1218_v40  ;;  %v1461_v46 = vsub.s32 0, %v1458_v45  ;;  %v208_v40 = vsub.s32 2, %v1458_v45  ;;  %s1355_s5 = scalar_lea.vmem %s1032_s3, 128  ;;  %p1360_p11 = scmp.lt.s32.totalorder %s1032_s3, %s1032_s3 }
  0x49   :  { %426 = vmatprep.subr.bf16.mxu1 %v1177_v14  ;;  %p1356_p10 = scmp.ne.s32.totalorder %s1032_s3, %s1355_s5  ;;  %p1361_p12 = scmp.lt.s32.totalorder %s1355_s5, %s1355_s5 }
  0x4a   :  { %v72_v49 = vrot.slane %v1463_v47, %v1461_v46  ;;  %v76_v50 = vrot.slane %v1465_v48, %v1461_v46 }
  0x4b   :  { %738 = vmatpush1.bf16.msra.mxu0 %v1216_v41  ;;  %p1362_p13 = por %p1361_p12, %p1360_p11 }
  0x4c   :  { %427 = vmatpush1.bf16.msra.mxu1 %v1179_v15  ;;  %739 = vmatprep.subr.bf16.mxu0 %v1221_v42 }
  0x4d   :  { %428 = vmatprep.subr.bf16.mxu1 %v1180_v16  ;;  %p1363_p0 = pnand %p1362_p13, %p1356_p10 }
  0x4f   :  { %740 = vmatpush1.bf16.msra.mxu0 %v1219_v43 }
  0x50   :  { %429 = vmatpush1.bf16.msra.mxu1 %v1182_v17 }
  0x51   :  { %430 = vmatprep.subr.bf16.mxu1 %v1183_v18 }
  0x54   :  { %431 = vmatpush1.bf16.msra.mxu1 %v1185_v19 }
  0x55   :  { %432 = vmatprep.subr.bf16.mxu1 %v1186_v20 }
  0x58   :  { %433 = vmatpush1.bf16.msra.mxu1 %v1188_v21 }
  0x59   :  { %434 = vmatprep.subr.bf16.mxu1 %v1189_v22 }
  0x5c   :  { %435 = vmatpush1.bf16.msra.mxu1 %v1191_v23 }
  0x5d   :  { %436 = vmatprep.subr.bf16.mxu1 %v1192_v24 }
  0x60   :  { %437 = vmatpush1.bf16.msra.mxu1 %v1194_v25 }
  0x61   :  { %438 = vmatprep.subr.bf16.mxu1 %v1195_v26 }
  0x64   :  { %439 = vmatpush1.bf16.msra.mxu1 %v1197_v27 }
  0x65   :  { %440 = vmatprep.subr.bf16.mxu1 %v1198_v28 }
  0x68   :  { %441 = vmatpush1.bf16.msra.mxu1 %v1200_v29 }
  0x69   :  { %442 = vmatprep.subr.bf16.mxu1 %v1201_v30 }
  0x6c   :  { %443 = vmatpush1.bf16.msra.mxu1 %v1203_v31 }
  0x6d   :  { %444 = vmatprep.subr.bf16.mxu1 %v1204_v32 }
  0x70   :  { %445 = vmatpush1.bf16.msra.mxu1 %v1206_v33 }
  0x71   :  { %446 = vmatprep.subr.bf16.mxu1 %v1207_v34 }
  0x74   :  { %447 = vmatpush1.bf16.msra.mxu1 %v1209_v35  ;;  %v1472_v35 = vsub.s32 1, %v1458_v45 }
  0x75   :  { %448 = vmatprep.subr.bf16.mxu1 %v1210_v36 }
  0x78   :  { %449 = vmatpush1.bf16.msra.mxu1 %v1212_v37 }
 0x114   :  { %v135_v51 = vpop.f32.mrb[0].mxu0 }
 0x115   :  { %v136_v52 = vadd.f32 %v135_v51, %v72_v49  ;;  %v137_v53 = vpop.f32.mrb[1].mxu0 }
 0x116   :  { %v138_v54 = vadd.f32 %v137_v53, %v76_v50  ;;  %v139_v55 = vpop.f32.mrb[2].mxu0 }
 0x117   :  { %v142_v56 = vmax.f32 %v136_v52, 0.0  ;;  %v140_v57 = vpop.f32.mrb[3].mxu0 }
 0x118   :  { %v143_v58 = vmax.f32 %v138_v54, 0.0 }
 0x119   :  { %v144_v59 = vrot.slane %v142_v56, 4  ;;  %v156_v60 = vmul.f32 %v142_v56, %v142_v56 }
 0x11a   :  { %v150_v61 = vrot.slane %v143_v58, 4  ;;  %v157_v62 = vmul.f32 %v143_v58, %v143_v58 }
 0x11b   :  { %v145_v63 = vadd.f32 %v144_v59, %v142_v56  ;;  %v158_v0 = vrot.slane %v156_v60, 4 }
 0x11c   :  { %v151_v1 = vadd.f32 %v150_v61, %v143_v58  ;;  %v164_v2 = vrot.slane %v157_v62, 4  ;;  %v1224_v61 = vld [vmem:[#allocation5 + $0x84] ss:$20 sps:$4 sm:$0xff]  }
 0x11d   :  { %v146_v3 = vrot.slane %v145_v63, 2  ;;  %v159_v4 = vadd.f32 %v158_v0, %v156_v60  ;;  %741 = vmatprep.subr.bf16.mxu0 %v1224_v61  ;;  %v1225_v0 = vld [vmem:[#allocation5 + $0xa8] ss:$20 sps:$4 sm:$0xff]  }
 0x11e   :  { %v152_v5 = vrot.slane %v151_v1, 2  ;;  %v165_v6 = vadd.f32 %v164_v2, %v157_v62  ;;  %v1222_v62 = vld [vmem:[#allocation5 + $0x80] ss:$20 sps:$4 sm:$0xff]   ;;  %v1228_v2 = vld [vmem:[#allocation5 + $0xd0] ss:$20 sps:$4 sm:$0xff]  }
 0x11f   :  { %v147_v7 = vadd.f32 %v146_v3, %v145_v63  ;;  %v160_v8 = vrot.slane %v159_v4, 2  ;;  %742 = vmatpush1.bf16.msra.mxu0 %v1222_v62  ;;  %v1227_v63 = vld [vmem:[#allocation5 + $0xac] ss:$20 sps:$4 sm:$0xff]   ;;  %v1236_v3 = vld [vmem:[#allocation5 + $0x124] ss:$20 sps:$4 sm:$0xff]  }
 0x120   :  { %v153_v9 = vadd.f32 %v152_v5, %v151_v1  ;;  %v166_v10 = vrot.slane %v165_v6, 2  ;;  %743 = vmatprep.subr.bf16.mxu0 %v1227_v63  ;;  %v1230_v1 = vld [vmem:[#allocation5 + $0xd4] ss:$20 sps:$4 sm:$0xff]   ;;  %v1239_v5 = vld [vmem:[#allocation5 + $0x14c] ss:$20 sps:$4 sm:$0xff]  }
 0x121   :  { %v148_v11 = vrot.slane %v147_v7, 1  ;;  %v161_v12 = vadd.f32 %v160_v8, %v159_v4  ;;  %v1234_v4 = vld [vmem:[#allocation5 + $0x120] ss:$20 sps:$4 sm:$0xff]   ;;  %v1240_v8 = vld [vmem:[#allocation5 + $0x170] ss:$20 sps:$4 sm:$0xff]  }
 0x122   :  { %v167_v13 = vadd.f32 %v166_v10, %v165_v6  ;;  %v154_v14 = vrot.slane %v153_v9, 1  ;;  %v1237_v6 = vld [vmem:[#allocation5 + $0x148] ss:$20 sps:$4 sm:$0xff]   ;;  %v1243_v10 = vld [vmem:[#allocation5 + $0x198] ss:$20 sps:$4 sm:$0xff]  }
 0x123   :  { %v149_v15 = vadd.f32 %v148_v11, %v147_v7  ;;  %v162_v16 = vrot.slane %v161_v12, 1  ;;  %744 = vmatpush1.bf16.msra.mxu0 %v1225_v0  ;;  %v1242_v7 = vld [vmem:[#allocation5 + $0x174] ss:$20 sps:$4 sm:$0xff]   ;;  %v1248_v11 = vld [vmem:[#allocation5 + $0x1c4] ss:$20 sps:$4 sm:$0xff]  }
 0x124   :  { %v168_v17 = vrot.slane %v167_v13, 1  ;;  %v155_v18 = vadd.f32 %v154_v14, %v153_v9  ;;  %745 = vmatprep.subr.bf16.mxu0 %v1230_v1  ;;  %v1245_v9 = vld [vmem:[#allocation5 + $0x19c] ss:$20 sps:$4 sm:$0xff]  }
 0x125   :  { %v163_v19 = vadd.f32 %v162_v16, %v161_v12  ;;  %v170_v20 = vmul.f32 0.125, %v149_v15  ;;  %v1246_v12 = vld [vmem:[#allocation5 + $0x1c0] ss:$20 sps:$4 sm:$0xff]   ;;  %v1249_v14 = vld [vmem:[#allocation5 + $0x1e8] ss:$20 sps:$4 sm:$0xff]  }
 0x126   :  { %v169_v21 = vadd.f32 %v168_v17, %v167_v13  ;;  %v171_v22 = vmul.f32 0.125, %v155_v18  ;;  %v1251_v13 = vld [vmem:[#allocation5 + $0x1ec] ss:$20 sps:$4 sm:$0xff]   ;;  %v1254_v15 = vld [vmem:[#allocation5 + $0x214] ss:$20 sps:$4 sm:$0xff]  }
 0x127   :  { %v172_v23 = vmul.f32 0.125, %v163_v19  ;;  %v174_v24 = vmul.f32 %v170_v20, %v170_v20  ;;  %746 = vmatpush1.bf16.msra.mxu0 %v1228_v2  ;;  %v1252_v16 = vld [vmem:[#allocation5 + $0x210] ss:$20 sps:$4 sm:$0xff]   ;;  %v1255_v18 = vld [vmem:[#allocation5 + $0x238] ss:$20 sps:$4 sm:$0xff]  }
 0x128   :  { %v173_v25 = vmul.f32 0.125, %v169_v21  ;;  %v175_v26 = vmul.f32 %v171_v22, %v171_v22  ;;  %v1257_v17 = vld [vmem:[#allocation5 + $0x23c] ss:$20 sps:$4 sm:$0xff]   ;;  %v1260_v19 = vld [vmem:[#allocation5 + $0x264] ss:$20 sps:$4 sm:$0xff]   ;;  %v252_v21 = vsub.s32 3, %v1458_v45 }
 0x129   :  { %v176_v27 = vsub.f32 %v172_v23, %v174_v24 }
 0x12a   :  { %v177_v28 = vsub.f32 %v173_v25, %v175_v26  ;;  %v257_v23 = vrot.slane %v1465_v48, %v252_v21 }
 0x12b   :  { %v178_v29 = vmax.f32 %v176_v27, 0.0 }
 0x12c   :  { %v179_v30 = vmax.f32 %v177_v28, 0.0 }
 0x12d   :  { %v180_v31 = vadd.f32 1e-05, %v178_v29 }
 0x12e   :  { %v181_v32 = vadd.f32 1e-05, %v179_v30 }
 0x12f   :  { %1277 = vrsqrt.f32 %v180_v31 }
 0x130   :  { %1279 = vrsqrt.f32 %v181_v32 }
 0x139   :  { %v1278_v33 = vpop.eup %1277 }
 0x13a   :  { %v1280_v34 = vpop.eup %1279  ;;  %v184_v36 = vmul.f32 %v1278_v33, %v1463_v47 }
 0x13b   :  { %v185_v37 = vmul.f32 %v1280_v34, %v1465_v48 }
 0x13c   :  { %v186_v38 = vmul.f32 %v184_v36, %v170_v20  ;;  %v199_v42 = vrot.slane %v184_v36, %v1472_v35  ;;  %v1258_v20 = vld [vmem:[#allocation5 + $0x260] ss:$20 sps:$4 sm:$0xff]  }
 0x13d   :  { %v187_v39 = vmul.f32 %v185_v37, %v171_v22  ;;  %v203_v44 = vrot.slane %v185_v37, %v1472_v35  ;;  %v253_v22 = vrot.slane %v1463_v47, %v252_v21 }
 0x13e   :  { %v190_v41 = vrot.slane %v186_v38, 7  ;;  %v204_v51 = vmul.f32 %v199_v42, %v142_v56  ;;  %v1233_v56 = vld [vmem:[#allocation5 + $0xfc] ss:$20 sps:$4 sm:$0xff]  }
 0x13f   :  { %v191_v43 = vrot.slane %v187_v39, 7  ;;  %v205_v53 = vmul.f32 %v203_v44, %v143_v58  ;;  %v1231_v58 = vld [vmem:[#allocation5 + $0xf8] ss:$20 sps:$4 sm:$0xff]   ;;  %747 = vmatprep.subr.bf16.mxu0 %v1233_v56 }
 0x140   :  { %v194_v49 = vsub.f32 %v1463_v47, %v190_v41  ;;  %748 = vmatpush1.bf16.msra.mxu0 %v1231_v58 }
 0x141   :  { %v195_v50 = vsub.f32 %v1465_v48, %v191_v43  ;;  %749 = vmatprep.subr.bf16.mxu0 %v1236_v3 }
 0x142   :  { %v209_v52 = vrot.slane %v194_v49, %v208_v40 }
 0x143   :  { %v213_v54 = vrot.slane %v195_v50, %v208_v40 }
 0x144   :  { %v214_v55 = vadd.f32 %v209_v52, %v204_v51  ;;  %750 = vmatpush1.bf16.msra.mxu0 %v1234_v4 }
 0x145   :  { %v215_v57 = vadd.f32 %v213_v54, %v205_v53  ;;  %751 = vmatprep.subr.bf16.mxu0 %v1239_v5 }
 0x146   :  { %v216_v60 = vpack.c.bf16 %v214_v55, %v214_v55 }
 0x147   :  { %v217_v59 = vpack.c.bf16 %v215_v57, %v215_v57 }
 0x148   :  { %752 = vmatpush1.bf16.msra.mxu0 %v1237_v6 }
 0x149   :  { %450 = vmatprep.mubr.bf16.mxu1 %v217_v59  ;;  %753 = vmatprep.subr.bf16.mxu0 %v1242_v7 }
 0x14a   :  { %451 = vmatmul.mubr.bf16.vlgmr.msra.gmra.mrb[0].mxu1 %v216_v60 }
 0x14c   :  { %754 = vmatpush1.bf16.msra.mxu0 %v1240_v8 }
 0x14d   :  { %755 = vmatprep.subr.bf16.mxu0 %v1245_v9 }
 0x150   :  { %756 = vmatpush1.bf16.msra.mxu0 %v1243_v10 }
 0x151   :  { %757 = vmatprep.subr.bf16.mxu0 %v1248_v11 }
 0x154   :  { %758 = vmatpush1.bf16.msra.mxu0 %v1246_v12 }
 0x155   :  { %759 = vmatprep.subr.bf16.mxu0 %v1251_v13 }
 0x158   :  { %760 = vmatpush1.bf16.msra.mxu0 %v1249_v14  ;;  %v515_v14 = vsub.s32 4, %v1458_v45 }
 0x159   :  { %761 = vmatprep.subr.bf16.mxu0 %v1254_v15 }
 0x15c   :  { %762 = vmatpush1.bf16.msra.mxu0 %v1252_v16 }
 0x15d   :  { %763 = vmatprep.subr.bf16.mxu0 %v1257_v17 }
 0x160   :  { %764 = vmatpush1.bf16.msra.mxu0 %v1255_v18 }
 0x161   :  { %765 = vmatprep.subr.bf16.mxu0 %v1260_v19  ;;  %v525_v19 = vsub.s32 5, %v1458_v45 }
 0x164   :  { %766 = vmatpush1.bf16.msra.mxu0 %v1258_v20 }
 0x21d   :  { %v452_v24 = vpop.f32.mrb[0].mxu1 }
 0x21e   :  { %v453_v25 = vadd.f32 %v452_v24, %v253_v22  ;;  %v454_v26 = vpop.f32.mrb[1].mxu1 }
 0x21f   :  { %v455_v27 = vadd.f32 %v454_v26, %v257_v23  ;;  %v456_v28 = vpop.f32.mrb[2].mxu1 }
 0x220   :  { %v459_v29 = vmax.f32 %v453_v25, 0.0  ;;  %v457_v30 = vpop.f32.mrb[3].mxu1 }
 0x221   :  { %v460_v31 = vmax.f32 %v455_v27, 0.0 }
 0x222   :  { %v461_v32 = vrot.slane %v459_v29, 4  ;;  %v473_v33 = vmul.f32 %v459_v29, %v459_v29 }
 0x223   :  { %v467_v34 = vrot.slane %v460_v31, 4  ;;  %v474_v36 = vmul.f32 %v460_v31, %v460_v31 }
 0x224   :  { %v462_v37 = vadd.f32 %v461_v32, %v459_v29  ;;  %v475_v38 = vrot.slane %v473_v33, 4 }
 0x225   :  { %v468_v39 = vadd.f32 %v467_v34, %v460_v31  ;;  %v481_v40 = vrot.slane %v474_v36, 4 }
 0x226   :  { %v463_v41 = vrot.slane %v462_v37, 2  ;;  %v476_v42 = vadd.f32 %v475_v38, %v473_v33  ;;  %v1263_v38 = vld [vmem:[#allocation5 + $0x178] ss:$20 sps:$4 sm:$0xff]  }
 0x227   :  { %v469_v43 = vrot.slane %v468_v39, 2  ;;  %v482_v44 = vadd.f32 %v481_v40, %v474_v36  ;;  %v1261_v36 = vld [vmem:[#allocation5 + $0x150] ss:$20 sps:$4 sm:$0xff]   ;;  %v1265_v40 = vld [vmem:[#allocation5 + $0x1a0] ss:$20 sps:$4 sm:$0xff]  }
 0x228   :  { %v464_v49 = vadd.f32 %v463_v41, %v462_v37  ;;  %v477_v50 = vrot.slane %v476_v42, 2  ;;  %v1262_v37 = vld [vmem:[#allocation5 + $0x10] ss:$20 sps:$4 sm:$0xff]   ;;  %1126 = vmatprep.subr.bf16.mxu1 %v1261_v36  ;;  %v1266_v41 = vld [vmem:[#allocation5 + $0x60] ss:$20 sps:$4 sm:$0xff]  }
 0x229   :  { %v470_v51 = vadd.f32 %v469_v43, %v468_v39  ;;  %v483_v52 = vrot.slane %v482_v44, 2  ;;  %1127 = vmatpush3.bf16.msra.mxu1 %v1262_v37  ;;  %v1264_v39 = vld [vmem:[#allocation5 + $0x38] ss:$20 sps:$4 sm:$0xff]   ;;  %v1270_v43 = vld [vmem:[#allocation5 + $0xb0] ss:$20 sps:$4 sm:$0xff]  }
 0x22a   :  { %v465_v53 = vrot.slane %v464_v49, 1  ;;  %v478_v54 = vadd.f32 %v477_v50, %v476_v42  ;;  %1128 = vmatprep.subr.bf16.mxu1 %v1263_v38  ;;  %v1269_v42 = vld [vmem:[#allocation5 + $0x1f0] ss:$20 sps:$4 sm:$0xff]   ;;  %v1273_v50 = vld [vmem:[#allocation5 + $0x240] ss:$20 sps:$4 sm:$0xff]  }
 0x22b   :  { %v471_v55 = vrot.slane %v470_v51, 1  ;;  %v484_v57 = vadd.f32 %v483_v52, %v482_v44  ;;  %v1271_v44 = vld [vmem:[#allocation5 + $0x218] ss:$20 sps:$4 sm:$0xff]   ;;  %v1275_v52 = vld [vmem:[#allocation5 + $0x268] ss:$20 sps:$4 sm:$0xff]  }
 0x22c   :  { %v466_v59 = vadd.f32 %v465_v53, %v464_v49  ;;  %v479_v60 = vrot.slane %v478_v54, 1  ;;  %v1272_v49 = vld [vmem:[#allocation5 + $0xd8] ss:$20 sps:$4 sm:$0xff]   ;;  %v1276_v53 = vld [vmem:[#allocation5 + $0x128] ss:$20 sps:$4 sm:$0xff]  }
 0x22d   :  { %v472_v61 = vadd.f32 %v471_v55, %v470_v51  ;;  %v485_v62 = vrot.slane %v484_v57, 1  ;;  %1129 = vmatpush3.bf16.msra.mxu1 %v1264_v39  ;;  %v1274_v51 = vld [vmem:[#allocation5 + $0x100] ss:$20 sps:$4 sm:$0xff]  }
 0x22e   :  { %v480_v63 = vadd.f32 %v479_v60, %v478_v54  ;;  %v487_v0 = vmul.f32 0.125, %v466_v59  ;;  %1130 = vmatprep.subr.bf16.mxu1 %v1265_v40  ;;  %v569_v54 = vsub.s32 6, %v1458_v45 }
 0x22f   :  { %v486_v1 = vadd.f32 %v485_v62, %v484_v57  ;;  %v488_v2 = vmul.f32 0.125, %v472_v61 }
 0x230   :  { %v489_v56 = vmul.f32 0.125, %v480_v63  ;;  %v491_v58 = vmul.f32 %v487_v0, %v487_v0  ;;  %v570_v55 = vrot.slane %v1463_v47, %v569_v54  ;;  %v574_v57 = vrot.slane %v1465_v48, %v569_v54 }
 0x231   :  { %v490_v3 = vmul.f32 0.125, %v486_v1  ;;  %v492_v4 = vmul.f32 %v488_v2, %v488_v2  ;;  %1131 = vmatpush3.bf16.msra.mxu1 %v1266_v41 }
 0x232   :  { %v493_v5 = vsub.f32 %v489_v56, %v491_v58 }
 0x233   :  { %v494_v6 = vsub.f32 %v490_v3, %v492_v4 }
 0x234   :  { %v495_v7 = vmax.f32 %v493_v5, 0.0 }
 0x235   :  { %v496_v8 = vmax.f32 %v494_v6, 0.0 }
 0x236   :  { %v497_v9 = vadd.f32 1e-05, %v495_v7 }
 0x237   :  { %v498_v10 = vadd.f32 1e-05, %v496_v8 }
 0x238   :  { %1281 = vrsqrt.f32 %v497_v9 }
 0x239   :  { %1283 = vrsqrt.f32 %v498_v10 }
 0x242   :  { %v1282_v11 = vpop.eup %1281 }
 0x243   :  { %v1284_v12 = vpop.eup %1283  ;;  %v501_v13 = vmul.f32 %v1282_v11, %v1463_v47 }
 0x244   :  { %v502_v15 = vmul.f32 %v1284_v12, %v1465_v48 }
 0x245   :  { %v503_v16 = vmul.f32 %v501_v13, %v487_v0  ;;  %v516_v18 = vrot.slane %v501_v13, %v515_v14 }
 0x246   :  { %v504_v17 = vmul.f32 %v502_v15, %v488_v2  ;;  %v520_v22 = vrot.slane %v502_v15, %v515_v14 }
 0x247   :  { %v507_v20 = vrot.slane %v503_v16, 7  ;;  %v521_v25 = vmul.f32 %v516_v18, %v459_v29  ;;  %v1267_v29 = vld [vmem:[#allocation5 + $0x1c8] ss:$20 sps:$4 sm:$0xff]  }
 0x248   :  { %v508_v21 = vrot.slane %v504_v17, 7  ;;  %v522_v27 = vmul.f32 %v520_v22, %v460_v31  ;;  %v1268_v31 = vld [vmem:[#allocation5 + $0x88] ss:$20 sps:$4 sm:$0xff]   ;;  %1132 = vmatprep.subr.bf16.mxu1 %v1267_v29 }
 0x249   :  { %v511_v23 = vsub.f32 %v1463_v47, %v507_v20  ;;  %1133 = vmatpush3.bf16.msra.mxu1 %v1268_v31 }
 0x24a   :  { %v512_v24 = vsub.f32 %v1465_v48, %v508_v21  ;;  %1134 = vmatprep.subr.bf16.mxu1 %v1269_v42 }
 0x24b   :  { %v526_v26 = vrot.slane %v511_v23, %v525_v19 }
 0x24c   :  { %v530_v28 = vrot.slane %v512_v24, %v525_v19 }
 0x24d   :  { %v531_v30 = vadd.f32 %v526_v26, %v521_v25  ;;  %1135 = vmatpush3.bf16.msra.mxu1 %v1270_v43  ;;  %v832_v43 = vsub.s32 7, %v1458_v45 }
 0x24e   :  { %v532_v32 = vadd.f32 %v530_v28, %v522_v27  ;;  %1136 = vmatprep.subr.bf16.mxu1 %v1271_v44 }
 0x24f   :  { %v533_v34 = vpack.c.bf16 %v531_v30, %v531_v30 }
 0x250   :  { %v534_v33 = vpack.c.bf16 %v532_v32, %v532_v32 }
 0x251   :  { %1137 = vmatpush3.bf16.msra.mxu1 %v1272_v49 }
 0x252   :  { %767 = vmatprep.mubr.bf16.mxu0 %v534_v33  ;;  %1138 = vmatprep.subr.bf16.mxu1 %v1273_v50 }
 0x253   :  { %768 = vmatmul.mubr.bf16.vlgmr.msra.gmra.mrb[4].mxu0 %v533_v34 }
 0x255   :  { %1139 = vmatpush3.bf16.msra.mxu1 %v1274_v51  ;;  %v62_v51 = vld [vmem:[#allocation7 + $0x10] sm:$0x3] }
 0x256   :  { %1140 = vmatprep.subr.bf16.mxu1 %v1275_v52 }
 0x259   :  { %1141 = vmatpush3.bf16.msra.mxu1 %v1276_v53  ;;  %v63_v53 = vld [vmem:[#allocation7 + $0x18] sm:$0x3] }
 0x326   :  { %v769_v59 = vpop.f32.mrb[4].mxu0 }
 0x327   :  { %v770_v60 = vadd.f32 %v769_v59, %v570_v55  ;;  %v771_v61 = vpop.f32.mrb[5].mxu0 }
 0x328   :  { %v772_v62 = vadd.f32 %v771_v61, %v574_v57  ;;  %v773_v63 = vpop.f32.mrb[6].mxu0 }
 0x329   :  { %v776_v0 = vmax.f32 %v770_v60, 0.0  ;;  %v774_v1 = vpop.f32.mrb[7].mxu0 }
 0x32a   :  { %v777_v2 = vmax.f32 %v772_v62, 0.0 }
 0x32b   :  { %v778_v56 = vrot.slane %v776_v0, 4  ;;  %v790_v58 = vmul.f32 %v776_v0, %v776_v0 }
 0x32c   :  { %v784_v3 = vrot.slane %v777_v2, 4  ;;  %v791_v4 = vmul.f32 %v777_v2, %v777_v2 }
 0x32d   :  { %v779_v5 = vadd.f32 %v778_v56, %v776_v0  ;;  %v792_v6 = vrot.slane %v790_v58, 4 }
 0x32e   :  { %v785_v7 = vadd.f32 %v784_v3, %v777_v2  ;;  %v798_v8 = vrot.slane %v791_v4, 4  ;;  %v887_v3 = vrot.slane %v62_v51, %v1472_v35 }
 0x32f   :  { %v780_v9 = vrot.slane %v779_v5, 2  ;;  %v793_v10 = vadd.f32 %v792_v6, %v790_v58 }
 0x330   :  { %v786_v11 = vrot.slane %v785_v7, 2  ;;  %v799_v12 = vadd.f32 %v798_v8, %v791_v4 }
 0x331   :  { %v781_v13 = vadd.f32 %v780_v9, %v779_v5  ;;  %v794_v14 = vrot.slane %v793_v10, 2 }
 0x332   :  { %v787_v15 = vadd.f32 %v786_v11, %v785_v7  ;;  %v800_v16 = vrot.slane %v799_v12, 2 }
 0x333   :  { %v782_v17 = vrot.slane %v781_v13, 1  ;;  %v795_v18 = vadd.f32 %v794_v14, %v793_v10 }
 0x334   :  { %v788_v19 = vrot.slane %v787_v15, 1  ;;  %v801_v20 = vadd.f32 %v800_v16, %v799_v12 }
 0x335   :  { %v783_v21 = vadd.f32 %v782_v17, %v781_v13  ;;  %v796_v22 = vrot.slane %v795_v18, 1 }
 0x336   :  { %v789_v23 = vadd.f32 %v788_v19, %v787_v15  ;;  %v802_v24 = vrot.slane %v801_v20, 1 }
 0x337   :  { %v797_v25 = vadd.f32 %v796_v22, %v795_v18  ;;  %v804_v26 = vmul.f32 0.125, %v783_v21 }
 0x338   :  { %v803_v27 = vadd.f32 %v802_v24, %v801_v20  ;;  %v805_v28 = vmul.f32 0.125, %v789_v23 }
 0x339   :  { %v806_v30 = vmul.f32 0.125, %v797_v25  ;;  %v808_v32 = vmul.f32 %v804_v26, %v804_v26 }
 0x33a   :  { %v807_v33 = vmul.f32 0.125, %v803_v27  ;;  %v809_v34 = vmul.f32 %v805_v28, %v805_v28 }
 0x33b   :  { %v810_v36 = vsub.f32 %v806_v30, %v808_v32 }
 0x33c   :  { %v811_v37 = vsub.f32 %v807_v33, %v809_v34 }
 0x33d   :  { %v812_v38 = vmax.f32 %v810_v36, 0.0 }
 0x33e   :  { %v813_v39 = vmax.f32 %v811_v37, 0.0 }
 0x33f   :  { %v814_v40 = vadd.f32 1e-05, %v812_v38 }
 0x340   :  { %v815_v41 = vadd.f32 1e-05, %v813_v39 }
 0x341   :  { %1285 = vrsqrt.f32 %v814_v40 }
 0x342   :  { %1287 = vrsqrt.f32 %v815_v41 }
 0x34b   :  { %v1286_v29 = vpop.eup %1285 }
 0x34c   :  { %v1288_v31 = vpop.eup %1287  ;;  %v818_v42 = vmul.f32 %v1286_v29, %v1463_v47 }
 0x34d   :  { %v819_v44 = vmul.f32 %v1288_v31, %v1465_v48 }
 0x34e   :  { %v820_v49 = vmul.f32 %v818_v42, %v804_v26  ;;  %v833_v52 = vrot.slane %v818_v42, %v832_v43 }
 0x34f   :  { %v821_v50 = vmul.f32 %v819_v44, %v805_v28  ;;  %v837_v57 = vrot.slane %v819_v44, %v832_v43 }
 0x350   :  { %v824_v54 = vrot.slane %v820_v49, 7  ;;  %v838_v61 = vmul.f32 %v833_v52, %v776_v0 }
 0x351   :  { %v825_v55 = vrot.slane %v821_v50, 7  ;;  %v839_v63 = vmul.f32 %v837_v57, %v777_v2 }
 0x352   :  { %v828_v59 = vsub.f32 %v62_v51, %v824_v54 }
 0x353   :  { %v829_v60 = vsub.f32 %v63_v53, %v825_v55 }
 0x354   :  { %v843_v62 = vrot.slane %v828_v59, %v1461_v46 }
 0x355   :  { %v847_v47 = vrot.slane %v829_v60, %v1461_v46 }
 0x356   :  { %v848_v1 = vadd.f32 %v843_v62, %v838_v61 }
 0x357   :  { %v849_v45 = vadd.f32 %v847_v47, %v839_v63 }
 0x358   :  { %v850_v48 = vpack.c.bf16 %v848_v1, %v848_v1 }
 0x359   :  { %v851_v56 = vpack.c.bf16 %v849_v45, %v849_v45 }
 0x35b   :  { %1016 = vmatprep.mubr.bf16.mxu1 %v851_v56 }
 0x35c   :  { %1017 = vmatmul.mubr.bf16.vlgmr.msra.gmra.mrb[4].mxu1 %v850_v48 }
 0x42f   :  { %v1142_v58 = vpop.f32.mrb[4].mxu1 }
 0x430   :  { %v1143_v4 = vpop.f32.mrb[5].mxu1 }
 0x431   :  { %v1144_v5 = vadd.f32 %v1143_v4, %v1142_v58  ;;  %v1145_v6 = vpop.f32.mrb[6].mxu1 }
 0x432   :  { %v1146_v0 = vpop.f32.mrb[7].mxu1 }
 0x433   :  { %v1019_v7 = vadd.f32 %v1144_v5, %v887_v3 }
 0x435   :  { %1024 = vst [vmem:[#allocation8] sm:$0xff] %v1019_v7 }
 0x436   :  { %1366 = shalt.err (!%p1363_p0)
}
 0x437   :  { %s1367_s8 = scalar_lea.hbm %s1515_s4, 128 }
 0x438   :  { %p1368_p1 = scmp.ne.s32.totalorder %s1515_s4, %s1367_s8  ;;  %p1371_p2 = scmp.lt.u32.totalorder %s1367_s8, %s1515_s4 }
 0x43a   :  { %p1373_p3 = pnand %p1371_p2, %p1368_p1 }
 0x43c   :  { %1376 = shalt.err (!%p1373_p3)
}
 0x43d   :  { %1034 = dma.vmem_to_hbm [thread:$0]  %s1032_s3, 128, %s1515_s4, [#allocation4]  }
 0x43e   :  { %1381 = dma.done.wait [#allocation4], 128  }
 0x43f   :  { %1382 = vsyncadd [#allocation4], 4294967168 }
 0x440   :  { %1038 = vsyncpa [#allocation3], 1 }
 0x441   :  { %1039 = vsyncpa [#allocation6], 1 }
 0x442   :  { %1040 = vsyncpa [#allocation4], 1 }

</bundles_post_ra>
